<compile_context>
chip_gen: v5e
topology: v5e:2x2
jax: 0.10.0
libtpu: 0.0.40
codegen_flags: <defaults>
</compile_context>

<pallas_src>
import functools

import jax
import jax.numpy as jnp
from jax.experimental import pallas as pl
from jax.experimental.pallas import tpu as pltpu


def _round_up(x, m):
    return (x + m - 1) // m * m


def _cores_per_chip():
    """Number of TensorCores sharing one chip's grid (megacore-style chips)."""
    try:
        kind = jax.devices()[0].device_kind.lower()
    except Exception:
        return 1
    if "v7" in kind or "v4" in kind or "v5p" in kind:
        return 2
    return 1


def _choose_batch_tiling(batch):
    """Pick (batch_tile, padded_batch, n_grid_steps).

    * tile cap 1024 rows (mem-bound tiled kernels hit ~85% of HBM roofline at
      512-1024 vs ~63% at 256); VMEM footprint stays tiny on all generations.
    * tb = round_up(cdiv(B, n_steps), 8) -> over-padding < 8*n_steps rows.
    * on 2-TC chips force >= 2 parallel steps (when B >= 16) so both cores work.
    """
    bp8 = _round_up(max(batch, 1), 8)
    cap = 1024
    n_cores = _cores_per_chip()
    min_steps = n_cores if bp8 >= 8 * n_cores else 1
    n_steps = max(min_steps, pl.cdiv(bp8, cap))
    tb = _round_up(pl.cdiv(bp8, n_steps), 8)
    n_steps = pl.cdiv(bp8, tb)
    return tb, tb * n_steps, n_steps


def pack_actor_encoder_params(params, feat_dim, traj_z_dim=128, cp_feat_dim=32):
    """One-time packing (hoisted out of the per-call hot path).

    Folds mlp2 into the mu/logvar heads:
        (h @ W2 + b2) @ Wx + bx  ==  h @ (W2 @ Wx) + (b2 @ Wx + bx)
    and packs all weights into one lane-dense bf16 slab plus a small f32 bias
    block.  Slab row layout (segment starts aligned to 16 rows for bf16 tiling):
        [0,        traj_z_dim)            mlp1 rows for traj_feats
        [off_pix,  off_pix + feat_dim)    mlp1 rows for pixel_feats
        [off_ctpt, off_ctpt + cp_feat)    mlp1 rows for f_ctpt
        [off_head, off_head + lanes)      fused [mu | logvar] head (mlp2 folded in)
    Bias block (f32, (8, lanes)): row 0 = mlp1 bias, row 1 = [mu | logvar] bias.
    """
    lanes = _round_up(3 * feat_dim, 128)
    off_pix = _round_up(traj_z_dim, 16)
    off_ctpt = off_pix + _round_up(feat_dim, 16)
    off_head = _round_up(off_ctpt + cp_feat_dim, 16)
    slab_rows = off_head + lanes

    f32 = jnp.float32
    w1 = params["mlp1_w"].T.astype(f32)            # (traj + feat + cp, feat)
    b1 = params["mlp1_b"].astype(f32)
    w2 = params["mlp2_w"].T.astype(f32)
    b2 = params["mlp2_b"].astype(f32)
    wmu, bmu = params["mu_w"].T.astype(f32), params["mu_b"].astype(f32)
    wlv, blv = params["logvar_w"].T.astype(f32), params["logvar_b"].astype(f32)

    # Algebraic fusion of mlp2 into both heads.
    wmu_f, bmu_f = w2 @ wmu, b2 @ wmu + bmu
    wlv_f, blv_f = w2 @ wlv, b2 @ wlv + blv

    slab = jnp.zeros((slab_rows, lanes), f32)
    slab = slab.at[0:traj_z_dim, :feat_dim].set(w1[0:traj_z_dim])
    slab = slab.at[off_pix:off_pix + feat_dim, :feat_dim].set(
        w1[traj_z_dim:traj_z_dim + feat_dim])
    slab = slab.at[off_ctpt:off_ctpt + cp_feat_dim, :feat_dim].set(
        w1[traj_z_dim + feat_dim:traj_z_dim + feat_dim + cp_feat_dim])
    slab = slab.at[off_head:off_head + feat_dim, :feat_dim].set(wmu_f)
    slab = slab.at[off_head:off_head + feat_dim, feat_dim:2 * feat_dim].set(wlv_f)

    bias = (jnp.zeros((8, lanes), f32)
            .at[0, :feat_dim].set(b1)
            .at[1, :feat_dim].set(bmu_f)
            .at[1, feat_dim:2 * feat_dim].set(blv_f))

    return jax.device_put(slab.astype(jnp.bfloat16)), jax.device_put(bias)


def _make_kernel(feat_dim, traj_z_dim, cp_feat_dim, lanes, off_pix, off_ctpt, off_head):
    f = feat_dim
    pad_lanes = lanes - 3 * f

    def kernel(traj_ref, pixel_ref, ctpt_ref, noise_ref, w_ref, bias_ref, out_ref):
        bf16 = jnp.bfloat16
        b1 = bias_ref[0:1, :]                       # (1, lanes) f32 mlp1 bias
        bh = bias_ref[1:2, :]                       # (1, lanes) f32 fused head bias

        # mlp1 over the three concatenated inputs, as three K-slices of one matmul.
        h = jnp.dot(traj_ref[...].astype(bf16), w_ref[0:traj_z_dim, :],
                    preferred_element_type=jnp.float32)
        h += jnp.dot(pixel_ref[...].astype(bf16), w_ref[off_pix:off_pix + f, :],
                     preferred_element_type=jnp.float32)
        h += jnp.dot(ctpt_ref[...].astype(bf16),
                     w_ref[off_ctpt:off_ctpt + cp_feat_dim, :],
                     preferred_element_type=jnp.float32)
        h += b1
        h = jnp.where(h > 0, h, 0.01 * h)           # F.leaky_relu, slope 0.01

        # mlp2 folded into the heads: lanes [0:f)=mu, [f:2f)=logvar, rest zero.
        head = jnp.dot(h.astype(bf16), w_ref[off_head:off_head + lanes, :],
                       preferred_element_type=jnp.float32) + bh

        mu = head[:, 0:f]
        lv = head[:, f:2 * f]
        z = mu + jnp.exp(lv * 0.5) * noise_ref[...]

        # Single full-width (unmasked) store: [mu | logvar | z | pad].
        parts = [mu, lv, z]
        if pad_lanes > 0:
            parts.append(jnp.zeros((mu.shape[0], pad_lanes), jnp.float32))
        out_ref[...] = jnp.concatenate(parts, axis=-1)

    return kernel


@functools.partial(jax.jit, static_argnames=("feat_dim", "traj_z_dim", "cp_feat_dim"))
def actor_encoder_forward(traj_feats, pixel_feats, f_ctpt, noise, wslab, bias,
                          *, feat_dim, traj_z_dim=128, cp_feat_dim=32):
    lanes = _round_up(3 * feat_dim, 128)
    off_pix = _round_up(traj_z_dim, 16)
    off_ctpt = off_pix + _round_up(feat_dim, 16)
    off_head = _round_up(off_ctpt + cp_feat_dim, 16)
    slab_rows = off_head + lanes

    B = traj_feats.shape[0]
    tb, bp, n_steps = _choose_batch_tiling(B)

    def prep(x):
        x = x.astype(jnp.float32)
        pad = bp - B
        return x if pad == 0 else jnp.pad(x, ((0, pad), (0, 0)))

    traj, pixel, ctpt, nz = prep(traj_feats), prep(pixel_feats), prep(f_ctpt), prep(noise)

    kernel = _make_kernel(feat_dim, traj_z_dim, cp_feat_dim, lanes,
                          off_pix, off_ctpt, off_head)

    def batch_spec(width):
        return pl.BlockSpec((tb, width), lambda i: (i, 0))

    def const_spec(rows, cols):
        return pl.BlockSpec((rows, cols), lambda i: (0, 0))

    out = pl.pallas_call(
        kernel,
        out_shape=jax.ShapeDtypeStruct((bp, lanes), jnp.float32),
        grid=(n_steps,),
        in_specs=[
            batch_spec(traj_z_dim),                 # traj_feats   (tb, 128)
            batch_spec(feat_dim),                   # pixel_feats  (tb, feat)
            batch_spec(cp_feat_dim),                # f_ctpt       (tb, 32)
            batch_spec(feat_dim),                   # noise        (tb, feat)
            const_spec(slab_rows, lanes),           # bf16 weight slab (grid-invariant)
            const_spec(8, lanes),                   # f32 bias block   (grid-invariant)
        ],
        out_specs=pl.BlockSpec((tb, lanes), lambda i: (i, 0)),   # [mu | lv | z | pad]
        compiler_params=pltpu.CompilerParams(dimension_semantics=("parallel",)),
    )(traj, pixel, ctpt, nz, wslab, bias)

    mu = out[:B, 0:feat_dim]
    logvar = out[:B, feat_dim:2 * feat_dim]
    z = out[:B, 2 * feat_dim:3 * feat_dim]
    return z, mu, logvar


def _reference_f32(traj_feats, pixel_feats, f_ctpt, params, noise):
    """Exact module semantics in f32 (unfused, unquantized)."""
    net = jnp.concatenate([traj_feats, pixel_feats, f_ctpt], axis=-1)
    h = net @ params["mlp1_w"].T + params["mlp1_b"]
    h = jnp.where(h > 0, h, 0.01 * h)
    net = h @ params["mlp2_w"].T + params["mlp2_b"]
    mu = net @ params["mu_w"].T + params["mu_b"]
    lv = net @ params["logvar_w"].T + params["logvar_b"]
    z = mu + jnp.exp(lv / 2) * noise
    return z, mu, lv


def _reference_bf16_weights(traj_feats, pixel_feats, f_ctpt, params, noise):
    """Same math as the kernel, with the same bf16 quantization points
    (folded weights in bf16, activations rounded to bf16 before each matmul,
    f32 accumulation) -> isolates kernel errors from the quantization choice."""
    def q(x):
        return x.astype(jnp.bfloat16).astype(jnp.float32)

    w1 = params["mlp1_w"].T.astype(jnp.float32)
    w2 = params["mlp2_w"].T.astype(jnp.float32)
    wmu = params["mu_w"].T.astype(jnp.float32)
    wlv = params["logvar_w"].T.astype(jnp.float32)
    wmu_f, bmu_f = q(w2 @ wmu), params["mlp2_b"] @ wmu + params["mu_b"]
    wlv_f, blv_f = q(w2 @ wlv), params["mlp2_b"] @ wlv + params["logvar_b"]

    a = jnp.concatenate([traj_feats, pixel_feats, f_ctpt], axis=-1)
    h = q(a) @ q(w1) + params["mlp1_b"]
    h = jnp.where(h > 0, h, 0.01 * h)
    mu = q(h) @ wmu_f + bmu_f
    lv = q(h) @ wlv_f + blv_f
    z = mu + jnp.exp(lv / 2) * noise
    return z, mu, lv


if __name__ == "__main__":
    # Shapes consistent with the module: feat_dim=32, traj_z_dim=128, cp_feat_dim=32, batch=8.
    B, feat_dim, traj_z_dim, cp_feat_dim = 8, 32, 128, 32
    in_total = feat_dim + traj_z_dim + cp_feat_dim

    key = jax.random.PRNGKey(0)
    keys = jax.random.split(key, 16)

    traj_feats = jax.random.normal(keys[0], (B, traj_z_dim), jnp.float32)
    pixel_feats = jax.random.normal(keys[1], (B, feat_dim), jnp.float32)
    f_ctpt = jax.random.normal(keys[2], (B, cp_feat_dim), jnp.float32)
    noise = jax.random.normal(keys[3], (B, feat_dim), jnp.float32)  # torch.randn equivalent

    def lin_init(kw, kb, out_f, in_f):
        # roughly matches nn.Linear's uniform(-1/sqrt(in), 1/sqrt(in))
        bound = 1.0 / jnp.sqrt(in_f)
        w = jax.random.uniform(kw, (out_f, in_f), jnp.float32, -bound, bound)
        b = jax.random.uniform(kb, (out_f,), jnp.float32, -bound, bound)
        return w, b

    params = {}
    params["mlp1_w"], params["mlp1_b"] = lin_init(keys[4], keys[5], feat_dim, in_total)
    params["mlp2_w"], params["mlp2_b"] = lin_init(keys[6], keys[7], feat_dim, feat_dim)
    params["mu_w"], params["mu_b"] = lin_init(keys[8], keys[9], feat_dim, feat_dim)
    params["logvar_w"], params["logvar_b"] = lin_init(keys[10], keys[11], feat_dim, feat_dim)

    # One-time packing (fold mlp2 into heads, bf16 slab + f32 bias block).
    wslab, bias = pack_actor_encoder_params(params, feat_dim, traj_z_dim, cp_feat_dim)

    z, mu, logvar = actor_encoder_forward(
        traj_feats, pixel_feats, f_ctpt, noise, wslab, bias,
        feat_dim=feat_dim, traj_z_dim=traj_z_dim, cp_feat_dim=cp_feat_dim)
    jax.block_until_ready((z, mu, logvar))

    # Tight check: reference with the same bf16 quantization points (isolates kernel math).
    z_q, mu_q, lv_q = _reference_bf16_weights(traj_feats, pixel_feats, f_ctpt, params, noise)
    assert jnp.allclose(mu, mu_q, atol=1e-3), "mu mismatch vs bf16-weight reference"
    assert jnp.allclose(logvar, lv_q, atol=1e-3), "logvar mismatch vs bf16-weight reference"
    assert jnp.allclose(z, z_q, atol=1e-3), "z mismatch vs bf16-weight reference"

    # Loose check: exact f32 module semantics (bounds the bf16 weight quantization error).
    z_r, mu_r, lv_r = _reference_f32(traj_feats, pixel_feats, f_ctpt, params, noise)
    assert jnp.allclose(mu, mu_r, atol=2e-2), "mu mismatch vs f32 reference"
    assert jnp.allclose(logvar, lv_r, atol=2e-2), "logvar mismatch vs f32 reference"
    assert jnp.allclose(z, z_r, atol=2e-2), "z mismatch vs f32 reference"

    # Second call at an awkward batch size: exercises batch padding (<8*n_steps rows)
    # and the multi-step parallel grid path on 2-TensorCore chips.
    B2 = 300
    traj2 = jax.random.normal(keys[12], (B2, traj_z_dim), jnp.float32)
    pixel2 = jax.random.normal(keys[13], (B2, feat_dim), jnp.float32)
    ctpt2 = jax.random.normal(keys[14], (B2, cp_feat_dim), jnp.float32)
    noise2 = jax.random.normal(keys[15], (B2, feat_dim), jnp.float32)
    z2, mu2, lv2 = actor_encoder_forward(
        traj2, pixel2, ctpt2, noise2, wslab, bias,
        feat_dim=feat_dim, traj_z_dim=traj_z_dim, cp_feat_dim=cp_feat_dim)
    jax.block_until_ready((z2, mu2, lv2))
    z2_q, mu2_q, lv2_q = _reference_bf16_weights(traj2, pixel2, ctpt2, params, noise2)
    assert jnp.allclose(mu2, mu2_q, atol=1e-3), "mu mismatch (B=300)"
    assert jnp.allclose(lv2, lv2_q, atol=1e-3), "logvar mismatch (B=300)"
    assert jnp.allclose(z2, z2_q, atol=1e-3), "z mismatch (B=300)"

    print("KERNEL_OK")
</pallas_src>

<mosaic_0001>
module attributes {stable_mosaic.version = 11 : i64} {
  func.func @kernel(%arg0: i32, %arg1: memref<8x128xf32, #tpu.memory_space<vmem>>, %arg2: memref<8x32xf32, #tpu.memory_space<vmem>>, %arg3: memref<8x32xf32, #tpu.memory_space<vmem>>, %arg4: memref<8x32xf32, #tpu.memory_space<vmem>>, %arg5: memref<320x128xbf16, #tpu.memory_space<vmem>>, %arg6: memref<8x128xf32, #tpu.memory_space<vmem>>, %arg7: memref<8x128xf32, #tpu.memory_space<vmem>>) attributes {dimension_semantics = [#tpu.dimension_semantics<parallel>], iteration_bounds = array<i64: 1>, scalar_prefetch = 0 : i64, scratch_operands = 0 : i64, tpu.core_type = #tpu.core_type<tc>, window_params = [{transform_indices = @transform_0, window_bounds = array<i64: 8, 128>}, {transform_indices = @transform_1, window_bounds = array<i64: 8, 32>}, {transform_indices = @transform_2, window_bounds = array<i64: 8, 32>}, {transform_indices = @transform_3, window_bounds = array<i64: 8, 32>}, {pipeline_mode = #tpu.pipeline_mode<synchronous>, transform_indices = @transform_4, window_bounds = array<i64: 320, 128>}, {pipeline_mode = #tpu.pipeline_mode<synchronous>, transform_indices = @transform_5, window_bounds = array<i64: 8, 128>}, {transform_indices = @transform_6, window_bounds = array<i64: 8, 128>}]} {
    %c0 = arith.constant 0 : index
    %c0_0 = arith.constant 0 : index
    %0 = vector.load %arg6[%c0, %c0_0] : memref<8x128xf32, #tpu.memory_space<vmem>>, vector<1x128xf32>
    %c1 = arith.constant 1 : index
    %c0_1 = arith.constant 0 : index
    %1 = vector.load %arg6[%c1, %c0_1] : memref<8x128xf32, #tpu.memory_space<vmem>>, vector<1x128xf32>
    %c0_2 = arith.constant 0 : index
    %c0_3 = arith.constant 0 : index
    %2 = vector.load %arg1[%c0_2, %c0_3] : memref<8x128xf32, #tpu.memory_space<vmem>>, vector<8x128xf32>
    %3 = arith.truncf %2 : vector<8x128xf32> to vector<8x128xbf16>
    %c0_4 = arith.constant 0 : index
    %c0_5 = arith.constant 0 : index
    %4 = vector.load %arg5[%c0_4, %c0_5] : memref<320x128xbf16, #tpu.memory_space<vmem>>, vector<128x128xbf16>
    %cst = arith.constant dense<0.000000e+00> : vector<8x128xf32>
    %5 = tpu.matmul %3, %4, %cst {dimension_numbers = #tpu.dot_dimension_numbers<[1], [0], [0], [1], [0, 0, 1, 1], [], []>} : vector<8x128xbf16>, vector<128x128xbf16>, vector<8x128xf32> -> vector<8x128xf32>
    %c0_6 = arith.constant 0 : index
    %c0_7 = arith.constant 0 : index
    %6 = vector.load %arg2[%c0_6, %c0_7] : memref<8x32xf32, #tpu.memory_space<vmem>>, vector<8x32xf32>
    %7 = arith.truncf %6 : vector<8x32xf32> to vector<8x32xbf16>
    %c128 = arith.constant 128 : index
    %c0_8 = arith.constant 0 : index
    %8 = vector.load %arg5[%c128, %c0_8] : memref<320x128xbf16, #tpu.memory_space<vmem>>, vector<32x128xbf16>
    %cst_9 = arith.constant dense<0.000000e+00> : vector<8x128xf32>
    %9 = tpu.matmul %7, %8, %cst_9 {dimension_numbers = #tpu.dot_dimension_numbers<[1], [0], [0], [1], [0, 0, 1, 1], [], []>} : vector<8x32xbf16>, vector<32x128xbf16>, vector<8x128xf32> -> vector<8x128xf32>
    %10 = arith.addf %5, %9 : vector<8x128xf32>
    %c0_10 = arith.constant 0 : index
    %c0_11 = arith.constant 0 : index
    %11 = vector.load %arg3[%c0_10, %c0_11] : memref<8x32xf32, #tpu.memory_space<vmem>>, vector<8x32xf32>
    %12 = arith.truncf %11 : vector<8x32xf32> to vector<8x32xbf16>
    %c160 = arith.constant 160 : index
    %c0_12 = arith.constant 0 : index
    %13 = vector.load %arg5[%c160, %c0_12] : memref<320x128xbf16, #tpu.memory_space<vmem>>, vector<32x128xbf16>
    %cst_13 = arith.constant dense<0.000000e+00> : vector<8x128xf32>
    %14 = tpu.matmul %12, %13, %cst_13 {dimension_numbers = #tpu.dot_dimension_numbers<[1], [0], [0], [1], [0, 0, 1, 1], [], []>} : vector<8x32xbf16>, vector<32x128xbf16>, vector<8x128xf32> -> vector<8x128xf32>
    %15 = arith.addf %10, %14 : vector<8x128xf32>
    %16 = vector.broadcast %0 : vector<1x128xf32> to vector<8x128xf32>
    %17 = arith.addf %15, %16 : vector<8x128xf32>
    %cst_14 = arith.constant 0.000000e+00 : f32
    %18 = vector.broadcast %cst_14 : f32 to vector<8x128xf32>
    %19 = arith.cmpf ogt, %17, %18 : vector<8x128xf32>
    %cst_15 = arith.constant 0.00999999977 : f32
    %20 = vector.broadcast %cst_15 : f32 to vector<8x128xf32>
    %21 = arith.mulf %20, %17 : vector<8x128xf32>
    %22 = arith.select %19, %17, %21 : vector<8x128xi1>, vector<8x128xf32>
    %23 = arith.truncf %22 : vector<8x128xf32> to vector<8x128xbf16>
    %c192 = arith.constant 192 : index
    %c0_16 = arith.constant 0 : index
    %24 = vector.load %arg5[%c192, %c0_16] : memref<320x128xbf16, #tpu.memory_space<vmem>>, vector<128x128xbf16>
    %cst_17 = arith.constant dense<0.000000e+00> : vector<8x128xf32>
    %25 = tpu.matmul %23, %24, %cst_17 {dimension_numbers = #tpu.dot_dimension_numbers<[1], [0], [0], [1], [0, 0, 1, 1], [], []>} : vector<8x128xbf16>, vector<128x128xbf16>, vector<8x128xf32> -> vector<8x128xf32>
    %26 = vector.broadcast %1 : vector<1x128xf32> to vector<8x128xf32>
    %27 = arith.addf %25, %26 : vector<8x128xf32>
    %28 = vector.extract_strided_slice %27 {offsets = [0, 0], sizes = [8, 32], strides = [1, 1]} : vector<8x128xf32> to vector<8x32xf32>
    %29 = vector.extract_strided_slice %27 {offsets = [0, 32], sizes = [8, 32], strides = [1, 1]} : vector<8x128xf32> to vector<8x32xf32>
    %cst_18 = arith.constant 5.000000e-01 : f32
    %30 = vector.broadcast %cst_18 : f32 to vector<8x32xf32>
    %31 = arith.mulf %29, %30 : vector<8x32xf32>
    %32 = math.exp %31 : vector<8x32xf32>
    %c0_19 = arith.constant 0 : index
    %c0_20 = arith.constant 0 : index
    %33 = vector.load %arg4[%c0_19, %c0_20] : memref<8x32xf32, #tpu.memory_space<vmem>>, vector<8x32xf32>
    %34 = arith.mulf %32, %33 : vector<8x32xf32>
    %35 = arith.addf %28, %34 : vector<8x32xf32>
    %cst_21 = arith.constant 0.000000e+00 : f32
    %36 = vector.broadcast %cst_21 : f32 to vector<8x32xf32>
    %37 = tpu.concatenate %28, %29, %35, %36 in 1 : vector<8x32xf32>, vector<8x32xf32>, vector<8x32xf32>, vector<8x32xf32> -> vector<8x128xf32>
    %c0_22 = arith.constant 0 : index
    %c0_23 = arith.constant 0 : index
    %38 = vector.load %arg7[%c0_22, %c0_23] : memref<8x128xf32, #tpu.memory_space<vmem>>, vector<8x128xf32>
    tpu.vector_store %arg7[%c0_22, %c0_23], %37 {strides = array<i32>} : memref<8x128xf32, #tpu.memory_space<vmem>>, vector<8x128xf32>,
    return
  }
  func.func @transform_0(%arg0: i32) -> (i32, i32) {
    %c0_i32 = arith.constant 0 : i32
    %c0_i32_0 = arith.constant 0 : i32
    return %arg0, %c0_i32 : i32, i32
  }
  func.func @transform_1(%arg0: i32) -> (i32, i32) {
    %c0_i32 = arith.constant 0 : i32
    %c0_i32_0 = arith.constant 0 : i32
    return %arg0, %c0_i32 : i32, i32
  }
  func.func @transform_2(%arg0: i32) -> (i32, i32) {
    %c0_i32 = arith.constant 0 : i32
    %c0_i32_0 = arith.constant 0 : i32
    return %arg0, %c0_i32 : i32, i32
  }
  func.func @transform_3(%arg0: i32) -> (i32, i32) {
    %c0_i32 = arith.constant 0 : i32
    %c0_i32_0 = arith.constant 0 : i32
    return %arg0, %c0_i32 : i32, i32
  }
  func.func @transform_4(%arg0: i32) -> (i32, i32) {
    %c0_i32 = arith.constant 0 : i32
    %c0_i32_0 = arith.constant 0 : i32
    %c0_i32_1 = arith.constant 0 : i32
    return %c0_i32, %c0_i32_0 : i32, i32
  }
  func.func @transform_5(%arg0: i32) -> (i32, i32) {
    %c0_i32 = arith.constant 0 : i32
    %c0_i32_0 = arith.constant 0 : i32
    %c0_i32_1 = arith.constant 0 : i32
    return %c0_i32, %c0_i32_0 : i32, i32
  }
  func.func @transform_6(%arg0: i32) -> (i32, i32) {
    %c0_i32 = arith.constant 0 : i32
    %c0_i32_0 = arith.constant 0 : i32
    return %arg0, %c0_i32 : i32, i32
  }
}

</mosaic_0001>

<bundles_post_ra>
// kernel: actor_encoder_forward.1
= control target key start
LH: loop header
LB: loop body
LE: loop exit
PB: predicated region body
PF: predicated region fallthrough
CT: control target
= control target key end

     0   :  { %11 = vsyncpa [#allocation3], 0  ;;  %s711_s0 = inlined_call_operand.hbm [shape: f32[8,128], index: 0, kind: input, shape index: {}]   ;;  %s712_s1 = inlined_call_operand.hbm [shape: f32[8,32], index: 1, kind: input, shape index: {}]   ;;  %s713_s2 = inlined_call_operand.hbm [shape: f32[8,32], index: 2, kind: input, shape index: {}]   ;;  %s714_s3 = inlined_call_operand.hbm [shape: f32[8,32], index: 3, kind: input, shape index: {}]   ;;  %s715_s4 = inlined_call_operand.hbm [shape: bf16[320,128], index: 4, kind: input, shape index: {}]   ;;  %s716_s5 = inlined_call_operand.hbm [shape: f32[8,128], index: 5, kind: input, shape index: {}]   ;;  %s717_s6 = inlined_call_operand.vmem [shape: f32[8,128], index: 6, kind: output, shape index: {}]  }
   0x1   :  { %12 = vsyncpa [#allocation5], 0 }
   0x2   :  { %13 = vsyncpa [#allocation8], 0  ;;  %s31_s23 = sshll.u32 %s712_s1, 4  ;;  %s32_s23 = int_to_ptr.hbm [resolvable:$true] %s31_s23 }
   0x3   :  { %14 = vsyncpa [#allocation11], 0  ;;  %s642_s24 = smov [#allocation4]   ;;  %s53_s28 = sshll.u32 %s714_s3, 4  ;;  %s54_s28 = int_to_ptr.hbm [resolvable:$true] %s53_s28 }
   0x4   :  { %s33_s25 = sshll.u32 %s642_s24, 4  ;;  %s643_s29 = smov [#allocation7]   ;;  %s34_s25 = int_to_ptr.vmem [resolvable:$true] %s33_s25 }
   0x5   :  { %36 = dma.hbm_to_vmem [thread:$0]  %s32_s23, 128, %s34_s25, [#allocation5]  }
   0x6   :  { %s55_s30 = sshll.u32 %s643_s29, 4  ;;  %s20_s9 = sshll.u32 %s711_s0, 4  ;;  %s56_s30 = int_to_ptr.vmem [resolvable:$true] %s55_s30  ;;  %s21_s9 = int_to_ptr.hbm [resolvable:$true] %s20_s9 }
   0x7   :  { %58 = dma.hbm_to_vmem [thread:$0]  %s54_s28, 128, %s56_s30, [#allocation8]  }
   0x8   :  { %s42_s11 = sshll.u32 %s713_s2, 4  ;;  %s644_s12 = smov [#allocation2]   ;;  %s43_s11 = int_to_ptr.hbm [resolvable:$true] %s42_s11 }
   0x9   :  { %s22_s13 = sshll.u32 %s644_s12, 4  ;;  %s645_s3 = smov [#allocation6]   ;;  %s23_s13 = int_to_ptr.vmem [resolvable:$true] %s22_s13 }
   0xa   :  { %25 = dma.hbm_to_vmem [thread:$0]  %s21_s9, 128, %s23_s13, [#allocation3]  }
   0xb   :  { %s44_s14 = sshll.u32 %s645_s3, 4  ;;  %s63_s17 = sshll.u32 %s715_s4, 4  ;;  %s45_s14 = int_to_ptr.vmem [resolvable:$true] %s44_s14  ;;  %s64_s17 = int_to_ptr.hbm [resolvable:$true] %s63_s17 }
   0xc   :  { %47 = dma.hbm_to_vmem [thread:$0]  %s43_s11, 128, %s45_s14, [#allocation5]  }
   0xd   :  { %s646_s0 = smov [#allocation9]   ;;  %s77_s2 = sshll.u32 %s716_s5, 4  ;;  %s78_s2 = int_to_ptr.hbm [resolvable:$true] %s77_s2 }
   0xe   :  { %s65_s18 = sshll.u32 %s646_s0, 4  ;;  %s647_s21 = smov 64   ;;  %s66_s18 = int_to_ptr.vmem [resolvable:$true] %s65_s18 }
   0xf   :  { %s648_s22 = smov 4   ;;  %s649_s23 = smov [#allocation10]  }
  0x10   :  { %71 = dma.hbm_to_vmem [thread:$0]  %s64_s17, 2560, %s66_s18, [#allocation8], %s647_s21, %s647_s21, %s648_s22  }
  0x11   :  { %s79_s24 = sshll.u32 %s649_s23, 4  ;;  %s80_s24 = int_to_ptr.vmem [resolvable:$true] %s79_s24 }
  0x12   :  { %82 = dma.hbm_to_vmem [thread:$0]  %s78_s2, 128, %s80_s24, [#allocation11]  }
  0x13   :  { %634 = dma.done.wait [#allocation3], 128  }
  0x14   :  { %635 = vsyncadd [#allocation3], 4294967168 }
  0x15   :  { %636 = dma.done.wait [#allocation5], 256  }
  0x16   :  { %637 = vsyncadd [#allocation5], 4294967040 }
  0x17   :  { %638 = dma.done.wait [#allocation8], 2688  }
  0x18   :  { %639 = vsyncadd [#allocation8], 4294964608 }
  0x19   :  { %640 = dma.done.wait [#allocation11], 128  }
  0x1a   :  { %641 = vsyncadd [#allocation11], 4294967168  ;;  %v463_v0 = vld [vmem:[#allocation9 + $0x38] sm:$0xff]  ;;  %v465_v2 = vld [vmem:[#allocation9 + $0x48] sm:$0xff]  ;;  %vm146_vm0 = vcmask 261120   ;;  %s650_s4 = smov 32  }
  0x1b   :  { %v467_v1 = vld [vmem:[#allocation9 + $0x58] sm:$0xff]  ;;  %211 = vmatpush.bf16.msra.mxu1 %v463_v0  ;;  %v462_v3 = vld [vmem:[#allocation9 + $0x30] sm:$0xff]  ;;  %156 = vmatpush.bf16.msra.mxu0 %v465_v2  ;;  %v464_v6 = vld [vmem:[#allocation9 + $0x40] sm:$0xff]  ;;  %s651_s5 = smov 96   ;;  %vm361_vm2 = vcmask 523264   ;;  %vm363_vm3 = vcmask 785408  }
  0x1c   :  { %251 = vmatpush.bf16.msra.mxu2 %v467_v1  ;;  %v466_v4 = vld [vmem:[#allocation9 + $0x50] sm:$0xff]  ;;  %v128_v7 = vld [vmem:[#allocation4] sm:$0xff]  ;;  %v475_v8 = vld [vmem:[#allocation9 + $0x98] sm:$0xff] }
  0x1d   :  { %v224_v5 = vld [vmem:[#allocation6] sm:$0xff]  ;;  %v461_v9 = vld [vmem:[#allocation9 + $0x28] sm:$0xff]  ;;  %v129_v11 = vpack.c.bf16 %v128_v7, %v128_v7  ;;  %330 = vmatpush.bf16.msra.mxu3 %v475_v8  ;;  %v460_v13 = vld [vmem:[#allocation9 + $0x20] sm:$0xff] }
  0x1e   :  { %v225_v10 = vpack.c.bf16 %v224_v5, %v224_v5  ;;  %v474_v12 = vld [vmem:[#allocation9 + $0x90] sm:$0xff]  ;;  %v473_v14 = vld [vmem:[#allocation9 + $0x88] sm:$0xff]  ;;  %v459_v15 = vld [vmem:[#allocation9 + $0x18] sm:$0xff] }
  0x1f   :  { %212 = vmatpush.bf16.msra.mxu1 %v462_v3  ;;  %157 = vmatpush.bf16.msra.mxu0 %v464_v6  ;;  %v458_v16 = vld [vmem:[#allocation9 + $0x10] sm:$0xff]  ;;  %v457_v17 = vld [vmem:[#allocation9 + $0x8] sm:$0xff]  ;;  %v456_v18 = vld [vmem:[#allocation9] sm:$0xff] }
  0x20   :  { %252 = vmatpush.bf16.msra.mxu2 %v466_v4  ;;  %v110_v19 = vld [vmem:[#allocation2] sm:$0xff]  ;;  %v471_v22 = vld [vmem:[#allocation9 + $0x78] sm:$0xff]  ;;  %v470_v23 = vld [vmem:[#allocation9 + $0x70] sm:$0xff] }
  0x21   :  { %331 = vmatpush.bf16.msra.mxu3 %v474_v12  ;;  %v111_v20 = vpack.c.bf16 %v110_v19, %v110_v19  ;;  %v472_v21 = vld [vmem:[#allocation9 + $0x80] sm:$0xff]  ;;  %v469_v24 = vld [vmem:[#allocation9 + $0x68] sm:$0xff]  ;;  %v346_v27 = vld [vmem:[#allocation7] sm:$0xff] }
  0x22   :  { %382 = vmatmul.msk.bf16.vlgmr.msra.gmra.mxu0 %vm146_vm0, %v129_v11  ;;  %v468_v25 = vld [vmem:[#allocation9 + $0x60] sm:$0xff]  ;;  %348 = vrot.lane.b32.xlu0 %v346_v27, %s650_s4 }
  0x23   :  { %213 = vmatpush.bf16.msra.mxu1 %v461_v9  ;;  %423 = vmatmul.msk.bf16.vlgmr.msra.gmra.mxu2 %vm146_vm0, %v225_v10  ;;  %v486_v33 = vld [vmem:[#allocation10] ss:$0 sm:$0xff]  ;;  %v487_v40 = vld [vmem:[#allocation10 + $0x1] ss:$0 sm:$0xff] }
  0x25   :  { %332 = vmatpush.bf16.msra.mxu3 %v473_v14 }
  0x27   :  { %214 = vmatpush.bf16.msra.mxu1 %v460_v13 }
  0x29   :  { %333 = vmatpush.bf16.msra.mxu3 %v472_v21 }
  0x2b   :  { %215 = vmatpush.bf16.msra.mxu1 %v459_v15 }
  0x2d   :  { %334 = vmatpush.bf16.msra.mxu3 %v471_v22 }
  0x2f   :  { %216 = vmatpush.bf16.msra.mxu1 %v458_v16 }
  0x31   :  { %335 = vmatpush.bf16.msra.mxu3 %v470_v23 }
  0x33   :  { %217 = vmatpush.bf16.msra.mxu1 %v457_v17 }
  0x35   :  { %336 = vmatpush.bf16.msra.mxu3 %v469_v24 }
  0x37   :  { %218 = vmatpush.bf16.msra.mxu1 %v456_v18 }
  0x39   :  { %337 = vmatpush.bf16.msra.mxu3 %v468_v25 }
  0x3a   :  { %219 = vmatmul.bf16.vlgmr.msra.gmra.mxu1 %v111_v20 }
  0x94   :  { %v349_v46 = vpop.permute.xlu0 %348 }
  0x9f   :  { %v159_v26 = vpop.f32.mrf.mxu0 }
  0xa6   :  { %v254_v28 = vpop.f32.mrf.mxu2 }
  0xa7   :  { %v161_v29 = vpop.f32.mrf.mxu0 }
  0xae   :  { %v256_v30 = vpop.f32.mrf.mxu2 }
  0xb7   :  { %v220_v31 = vpop.f32.mrf.mxu1 }
  0xb8   :  { %v221_v32 = vadd.f32 %v220_v31, %v159_v26 }
  0xba   :  { %v258_v34 = vadd.f32 %v254_v28, %v221_v32 }
  0xbc   :  { %v260_v35 = vadd.f32 %v486_v33, %v258_v34 }
  0xbe   :  { %vm261_vm1 = vcmp.gt.f32.partialorder %v260_v35, 0.0  ;;  %v262_v36 = vmul.f32 0.01, %v260_v35 }
  0xbf   :  { %v222_v37 = vpop.f32.mrf.mxu1 }
  0xc0   :  { %v263_v38 = vsel %vm261_vm1, %v260_v35, %v262_v36 }
  0xc1   :  { %v264_v39 = vpack.c.bf16 %v263_v38, %v263_v38 }
  0xc3   :  { %338 = vmatmul.bf16.vlgmr.msra.gmra.mxu3 %v264_v39 }
 0x146   :  { %v339_v41 = vpop.f32.mrf.mxu3 }
 0x147   :  { %v340_v42 = vadd.f32 %v487_v40, %v339_v41 }
 0x149   :  { %v343_v43 = vmul.f32 0.5, %v340_v42 }
 0x14b   :  { %v344_v44 = vmul.f32 1.442695, %v343_v43 }
 0x14d   :  { %488 = vpow2.f32 %v344_v44 }
 0x14e   :  { %v341_v45 = vpop.f32.mrf.mxu3 }
 0x153   :  { %v489_v47 = vpop.eup %488 }
 0x154   :  { %v351_v48 = vmul.f32 %v489_v47, %v349_v46 }
 0x156   :  { %353 = vrot.lane.b32.xlu0 %v351_v48, %s651_s5 }
 0x1c8   :  { %v354_v49 = vpop.permute.xlu0 %353 }
 0x1c9   :  { %v356_v50 = vadd.f32 %v354_v49, %v340_v42 }
 0x1cb   :  { %358 = vrot.lane.b32.xlu1 %v356_v50, %s647_s21 }
 0x23d   :  { %v359_v51 = vpop.permute.xlu1 %358 }
 0x23e   :  { %v362_v52 = vsel %vm361_vm2, %v340_v42, %v359_v51 }
 0x23f   :  { %v364_v53 = vsel %vm363_vm3, %v362_v52, 0.0 }
 0x240   :  { %365 = vst [vmem:[%s717_s6] sm:$0xff] %v364_v53 }
 0x241   :  { %370 = vsyncpa [#allocation3], 1 }
 0x242   :  { %371 = vsyncpa [#allocation5], 1 }
 0x243   :  { %372 = vsyncpa [#allocation8], 1 }
 0x244   :  { %373 = vsyncpa [#allocation11], 1 }

</bundles_post_ra>
